<compile_context>
chip_gen: v6e
topology: v6e:2x2x1
jax: 0.10.0
libtpu: 0.0.40
codegen_flags: <defaults>
</compile_context>

<pallas_src>
import jax
import jax.numpy as jnp
from jax.experimental import pallas as pl
from jax.experimental.pallas import tpu as pltpu


# ---------------------------------------------------------------------------
# Deterministic parameter construction (shapes implied by Network.__init__).
# Unused by forward() (which is identity), mirroring the reference module.
# ---------------------------------------------------------------------------
def init_params(key):
    ks = jax.random.split(key, 10)
    return {
        "conv1_w": jax.random.normal(ks[0], (6, 1, 5, 5), jnp.float32) * 0.1,
        "conv1_b": jax.random.normal(ks[1], (6,), jnp.float32) * 0.1,
        "conv2_w": jax.random.normal(ks[2], (12, 6, 5, 5), jnp.float32) * 0.1,
        "conv2_b": jax.random.normal(ks[3], (12,), jnp.float32) * 0.1,
        "fc1_w": jax.random.normal(ks[4], (120, 12 * 4 * 4), jnp.float32) * 0.1,
        "fc1_b": jax.random.normal(ks[5], (120,), jnp.float32) * 0.1,
        "fc2_w": jax.random.normal(ks[6], (60, 120), jnp.float32) * 0.1,
        "fc2_b": jax.random.normal(ks[7], (60,), jnp.float32) * 0.1,
        "out_w": jax.random.normal(ks[8], (10, 60), jnp.float32) * 0.1,
        "out_b": jax.random.normal(ks[9], (10,), jnp.float32) * 0.1,
    }


# ---------------------------------------------------------------------------
# Pallas kernel: identity via a single HBM -> HBM DMA (no VMEM staging,
# no grid, no padding/reshape passes).
# ---------------------------------------------------------------------------
def _identity_dma_kernel(x_hbm_ref, o_hbm_ref, sem):
    cp = pltpu.make_async_copy(x_hbm_ref, o_hbm_ref, sem)
    cp.start()
    cp.wait()


@jax.jit
def network_forward_pallas(t):
    """Identity forward implemented as one HBM->HBM DMA Pallas kernel.

    Kept only as the required Pallas scaffold; the production path is
    `network_forward` below (literal `return t`).
    """
    return pl.pallas_call(
        _identity_dma_kernel,
        out_shape=jax.ShapeDtypeStruct(t.shape, t.dtype),
        in_specs=[pl.BlockSpec(memory_space=pl.ANY)],
        out_specs=pl.BlockSpec(memory_space=pl.ANY),
        scratch_shapes=[pltpu.SemaphoreType.DMA(())],
    )(t)


def network_forward(t, params=None):
    """Forward pass of `Network`: identity (the layers are never used).

    This is the zero-overhead implementation of the reference semantics.
    Use `network_forward_pallas` if a Pallas pass is explicitly required.
    """
    del params  # forward() does not use the layers (matches the reference)
    return t


if __name__ == "__main__":
    key = jax.random.PRNGKey(0)
    k_x, k_p = jax.random.split(key)

    # MNIST-style input implied by the layer shapes (1 channel, 28x28 feeds
    # the conv stack); small batch for the test.  NCHW layout.
    x = jax.random.normal(k_x, (2, 1, 28, 28), jnp.float32)
    params = init_params(k_p)

    # Production path: literal identity.
    y_fast = network_forward(x, params)

    # Required Pallas kernel path: single HBM->HBM DMA identity.
    y_kernel = network_forward_pallas(x)
    y_kernel = jax.block_until_ready(y_kernel)

    # Verify identity semantics for both paths.
    assert y_fast.shape == x.shape and y_fast.dtype == x.dtype
    assert y_kernel.shape == x.shape and y_kernel.dtype == x.dtype
    assert bool(jnp.all(y_fast == x))
    assert bool(jnp.all(y_kernel == x))

    print("KERNEL_OK")
</pallas_src>

<mosaic_0001>
module attributes {stable_mosaic.version = 11 : i64} {
  func.func @_identity_dma_kernel(%arg0: memref<2x1x28x28xf32, #tpu.memory_space<any>>, %arg1: memref<2x1x28x28xf32, #tpu.memory_space<any>>, %arg2: memref<!tpu.dma_semaphore, #tpu.memory_space<semaphore_mem>>) attributes {dimension_semantics = [], scalar_prefetch = 0 : i64, scratch_operands = 1 : i64, tpu.core_type = #tpu.core_type<tc>} {
    tpu.enqueue_dma source(%arg0 : memref<2x1x28x28xf32, #tpu.memory_space<any>>) target(%arg1 : memref<2x1x28x28xf32, #tpu.memory_space<any>>) target_semaphore(%arg2 : memref<!tpu.dma_semaphore, #tpu.memory_space<semaphore_mem>>)
    tpu.wait_dma2 semaphore(%arg2 : memref<!tpu.dma_semaphore, #tpu.memory_space<semaphore_mem>>) src(%arg0 : memref<2x1x28x28xf32, #tpu.memory_space<any>>) dst(%arg1 : memref<2x1x28x28xf32, #tpu.memory_space<any>>)
    return
  }
}

</mosaic_0001>

<bundles_post_ra>
// kernel: network_forward_pallas.1
= control target key start
LH: loop header
LB: loop body
LE: loop exit
PB: predicated region body
PF: predicated region fallthrough
CT: control target
= control target key end

     0   :  { %s166_s0 = inlined_call_operand.vmem [shape: f32[2,1,28,28], index: 0, kind: input, shape index: {}]   ;;  %s167_s1 = inlined_call_operand.vmem [shape: f32[2,1,28,28], index: 1, kind: output, shape index: {}]  }
   0x1   :  { %v46_v0 = vld [vmem:[%s166_s0] sm:$0xff]  ;;  %v48_v1 = vld [vmem:[%s166_s0 + $0x8] sm:$0xff]  ;;  %v50_v2 = vld [vmem:[%s166_s0 + $0x10] sm:$0xff] }
   0x2   :  { %47 = vst [vmem:[%s167_s1] sm:$0xff] %v46_v0  ;;  %49 = vst [vmem:[%s167_s1 + $0x8] sm:$0xff] %v48_v1  ;;  %v52_v3 = vld [vmem:[%s166_s0 + $0x20] sm:$0xff]  ;;  %v54_v4 = vld [vmem:[%s166_s0 + $0x28] sm:$0xff] }
   0x3   :  { %51 = vst [vmem:[%s167_s1 + $0x10] sm:$0xff] %v50_v2  ;;  %v56_v5 = vld [vmem:[%s166_s0 + $0x30] sm:$0xff]  ;;  %53 = vst [vmem:[%s167_s1 + $0x20] sm:$0xff] %v52_v3  ;;  %v101_v6 = vld [vmem:[%s166_s0 + $0x18] sm:$0xf] }
   0x4   :  { %55 = vst [vmem:[%s167_s1 + $0x28] sm:$0xff] %v54_v4  ;;  %57 = vst [vmem:[%s167_s1 + $0x30] sm:$0xff] %v56_v5  ;;  %v103_v7 = vld [vmem:[%s166_s0 + $0x38] sm:$0xf] }
   0x5   :  { %102 = vst [vmem:[%s167_s1 + $0x18] sm:$0xf] %v101_v6  ;;  %104 = vst [vmem:[%s167_s1 + $0x38] sm:$0xf] %v103_v7 }
   0x6   :  { %75 = vsyncadd [#allocation2], 896 }
   0x7   :  { %106 = dma.done.wait [#allocation2], 896 }
   0x8   :  { %107 = vsyncadd [#allocation2], 4294966400 }
   0x9   :  { %81 = vsyncmov [#allocation2] }
   0xc   :  { %s82_s9 = vpop.sfrf %81 }
   0xd   :  { %p105_p0 = scmp.ne.s32.totalorder %s82_s9, 0 }
   0xf   :  { %86 = shalt.err (%p105_p0)  }

</bundles_post_ra>
